<compile_context>
chip_gen: v7x
topology: tpu7x:2x2x1
jax: 0.10.0
libtpu: 0.0.40
codegen_flags: <defaults>
</compile_context>

<pallas_src>
import functools

import jax
import jax.numpy as jnp
from jax.experimental import pallas as pl
from jax.experimental.pallas import tpu as pltpu


# ----------------------------------------------------------------------------
# Path 1: small-vocab fast path — table resident in VMEM, one-hot MXU gather.
# ----------------------------------------------------------------------------
def _embedding_vmem_kernel(scale, ids_ref, w_ref, out_ref):
    ids = ids_ref[...]                                        # (bt, 1) int32
    bt = ids.shape[0]
    vocab = w_ref.shape[0]
    iota = jax.lax.broadcasted_iota(jnp.int32, (bt, vocab), 1)
    onehot = (iota == ids).astype(w_ref.dtype)                # exact 0/1
    gathered = jnp.dot(onehot, w_ref[...], preferred_element_type=jnp.float32)
    vals = gathered.astype(out_ref.dtype)                     # cast first ...
    if scale is not None:                                     # ... then scale
        vals = vals * jnp.asarray(scale, dtype=out_ref.dtype)
    out_ref[...] = vals


def _embedding_small_vocab(flat_ids, weight, scale, out_dtype):
    n_tok = flat_ids.shape[0]
    vocab, hidden = weight.shape
    block_t = max(8, min(256, ((n_tok + 7) // 8) * 8))
    n_blocks = pl.cdiv(n_tok, block_t)
    padded = n_blocks * block_t
    if padded != n_tok:
        flat_ids = jnp.pad(flat_ids, (0, padded - n_tok))     # id 0 is in range
    ids2d = flat_ids.reshape(padded, 1)

    out = pl.pallas_call(
        functools.partial(_embedding_vmem_kernel, scale),
        out_shape=jax.ShapeDtypeStruct((padded, hidden), out_dtype),
        grid=(n_blocks,),
        in_specs=[
            pl.BlockSpec((block_t, 1), lambda i: (i, 0)),
            pl.BlockSpec((vocab, hidden), lambda i: (0, 0)),   # table resident
        ],
        out_specs=pl.BlockSpec((block_t, hidden), lambda i: (i, 0)),
        compiler_params=pltpu.CompilerParams(
            dimension_semantics=("parallel",)),
    )(ids2d, weight)
    return out[:n_tok]


# ----------------------------------------------------------------------------
# Path 2: HBM gather path — manual row DMAs, chunked cast/store overlap.
# ----------------------------------------------------------------------------
def _embedding_gather_kernel(block_t, chunk, n_slots, scale,
                             ids_ref, w_hbm, out_ref, rows_vmem, sems):
    """Gather block_t embedding rows from HBM, chunk by chunk.

    ids_ref  : SMEM int32[padded_n_tok]              (scalar prefetch)
    w_hbm    : HBM  [vocab, *row_shape]              (pl.ANY, manual row DMAs)
    out_ref  : VMEM [block_t, *row_shape] out_dtype  (lane-dense output block)
    rows_vmem: VMEM [n_slots, chunk, *row_shape]     (DMA landing buffers)
    sems     : DMA semaphore array [n_slots]         (one per chunk slot)
    """
    n_chunks = block_t // chunk          # static
    lookahead = n_slots - 1              # static
    t0 = pl.program_id(0) * block_t

    def issue_chunk(c, slot):
        base = t0 + c * chunk
        for j in range(chunk):                                  # static unroll
            tok = ids_ref[base + j]                             # SMEM read (before any wait)
            pltpu.make_async_copy(w_hbm.at[tok], rows_vmem.at[slot, j],
                                  sems.at[slot]).start()

    # Prime the pipeline: `lookahead` chunks of row DMAs in flight.
    for c in range(min(lookahead, n_chunks)):                   # static unroll
        issue_chunk(c, c % n_slots)

    @pl.loop(0, n_chunks)
    def _(c):
        slot = c % n_slots
        nxt = c + lookahead

        # Issue the next chunk's DMAs FIRST (keeps ~lookahead*chunk row copies
        # outstanding and puts the SMEM id reads ahead of the waits).
        @pl.when(nxt < n_chunks)
        def _():
            issue_chunk(nxt, nxt % n_slots)

        # Wait for the `chunk` row copies of chunk c.  NOTE: the wait
        # descriptor shape must match the per-row start descriptor above so
        # the byte counts line up (one wait per started row copy).
        for _j in range(chunk):                                 # static unroll
            pltpu.make_async_copy(w_hbm.at[0], rows_vmem.at[0, 0],
                                  sems.at[slot]).wait()

        # Cast (+ optional sqrt(H) scale in out dtype) this chunk and store it
        # while the later chunks' DMAs are still in flight.
        rows = rows_vmem[slot]
        vals = rows.astype(out_ref.dtype)
        if scale is not None:
            vals = vals * jnp.asarray(scale, dtype=out_ref.dtype)
        o = pl.multiple_of(c * chunk, chunk)
        out_ref[pl.ds(o, chunk)] = vals


def _pick_sub(hidden, itemsize):
    """Largest-lane, tile-aligned (sub, H//sub) view of a row, if one exists."""
    pack = 8 * max(1, 4 // itemsize)        # sublane pack: 8 f32, 16 bf16/f16
    cands = [s for s in range(1, hidden + 1)
             if hidden % s == 0 and (hidden // s) % 128 == 0]
    if not cands:
        return 1                            # no lane-dense split -> 2-D fallback
    for s in cands:                         # prefer full-tile-aligned rows
        if s % pack == 0:
            return s
    for s in cands:                         # then 8-sublane aligned
        if s % 8 == 0:
            return s
    return cands[-1]


# ----------------------------------------------------------------------------
# Public wrapper
# ----------------------------------------------------------------------------
def embedding_forward(x, weight, *, normalize=False, out_dtype=jnp.float32,
                      block_tokens=None, chunk_rows=32, dma_lookahead=2,
                      use_vmem_table=None):
    """Pallas equivalent of Embedding.forward.

    x:      integer token ids, any shape (e.g. [batch, seq]).
    weight: [vocab_size, hidden_size] embedding table (bf16 / f16 / f32).
    """
    orig_shape = x.shape
    vocab_size, hidden_size = weight.shape
    if out_dtype is None:
        out_dtype = weight.dtype
    out_dtype = jnp.dtype(out_dtype)

    # Clamp ids so no DMA source can be out of range (PyTorch would raise).
    flat_ids = jnp.clip(x.reshape(-1).astype(jnp.int32), 0, vocab_size - 1)
    n_tok = flat_ids.shape[0]
    if n_tok == 0:
        return jnp.zeros(orig_shape + (hidden_size,), out_dtype)

    scale = float(hidden_size) ** 0.5 if normalize else None
    w_itemsize = jnp.dtype(weight.dtype).itemsize

    # ---- small-vocab fast path -------------------------------------------
    table_bytes = vocab_size * hidden_size * w_itemsize
    if use_vmem_table is None:
        use_vmem_table = (vocab_size <= 4096) and (table_bytes <= (2 << 20))
    if use_vmem_table:
        out = _embedding_small_vocab(flat_ids, weight, scale, out_dtype)
        return out.reshape(*orig_shape, hidden_size)

    # ---- HBM gather path ---------------------------------------------------
    sub = _pick_sub(hidden_size, w_itemsize)
    if sub > 1:
        row_shape = (sub, hidden_size // sub)
        w_view = weight.reshape(vocab_size, *row_shape)   # free row-major split
        out_map = lambda i, ids: (i, 0, 0)
    else:
        row_shape = (hidden_size,)
        w_view = weight
        out_map = lambda i, ids: (i, 0)

    chunk = max(8, (int(chunk_rows) // 8) * 8)
    n_slots = max(2, int(dma_lookahead) + 1)              # chunk-slot buffers

    # Generation-aware sizing (v5e/v6e: 128 MiB VMEM, v7x: 64 MiB).
    vmem_cap = 64 << 20
    try:
        info = pltpu.get_tpu_info()
        vmem_cap = int(getattr(info, "vmem_capacity_bytes", vmem_cap)) or vmem_cap
    except Exception:
        pass

    out_itemsize = out_dtype.itemsize
    if block_tokens is None:
        block_tokens = 1024 if vmem_cap >= (96 << 20) else 512
    budget = int(vmem_cap * 0.6)
    per_tok_out = 2 * hidden_size * out_itemsize          # double-buffered out block
    avail = budget - n_slots * chunk * hidden_size * w_itemsize
    max_bt = max(chunk, avail // max(per_tok_out, 1))
    block_t = min(int(block_tokens), int(max_bt))
    block_t = max(chunk, (block_t // chunk) * chunk)

    padded_min = ((n_tok + chunk - 1) // chunk) * chunk
    block_t = max(chunk, (min(block_t, padded_min) // chunk) * chunk)
    n_blocks = pl.cdiv(n_tok, block_t)
    padded = n_blocks * block_t
    if padded != n_tok:
        flat_ids = jnp.pad(flat_ids, (0, padded - n_tok))  # id 0 is in range

    need = (2 * block_t * hidden_size * out_itemsize
            + n_slots * chunk * hidden_size * w_itemsize + (2 << 20))
    vmem_limit = int(min(max(need, 32 << 20), max(vmem_cap - (2 << 20), need)))

    kernel = functools.partial(_embedding_gather_kernel,
                               block_t, chunk, n_slots, scale)

    out = pl.pallas_call(
        kernel,
        out_shape=jax.ShapeDtypeStruct((padded,) + row_shape, out_dtype),
        grid_spec=pltpu.PrefetchScalarGridSpec(
            num_scalar_prefetch=1,                  # flat ids land in SMEM
            grid=(n_blocks,),
            in_specs=[pl.BlockSpec(memory_space=pl.ANY)],   # table stays in HBM
            out_specs=pl.BlockSpec((block_t,) + row_shape, out_map),
            scratch_shapes=[
                pltpu.VMEM((n_slots, chunk) + row_shape, weight.dtype),
                pltpu.SemaphoreType.DMA((n_slots,)),
            ],
        ),
        compiler_params=pltpu.CompilerParams(
            dimension_semantics=("parallel",),      # shard token blocks on v7x
            vmem_limit_bytes=vmem_limit,
        ),
    )(flat_ids, w_view)

    out = out.reshape(padded, hidden_size)[:n_tok]
    return out.reshape(*orig_shape, hidden_size)


def embedding_ref(x, weight, *, normalize=False, out_dtype=jnp.float32):
    out = jnp.take(weight, x.astype(jnp.int32), axis=0).astype(out_dtype)
    if normalize:
        out = out * jnp.asarray(weight.shape[-1] ** 0.5, dtype=out.dtype)
    return out


if __name__ == "__main__":
    key = jax.random.PRNGKey(0)
    k_w, k_ids = jax.random.split(key)

    vocab_size, hidden_size = 64, 128
    batch, seq = 2, 8

    weight = (jax.random.normal(k_w, (vocab_size, hidden_size), jnp.float32)
              * 0.02).astype(jnp.bfloat16)
    x = jax.random.randint(k_ids, (batch, seq), 0, vocab_size, dtype=jnp.int32)

    ref = embedding_ref(x, weight)
    ref_n = embedding_ref(x, weight, normalize=True)

    # 1) small-vocab VMEM fast path (default dispatch at these shapes)
    out = jax.block_until_ready(embedding_forward(x, weight))
    assert out.shape == (batch, seq, hidden_size)
    assert out.dtype == jnp.float32
    assert jnp.allclose(out, ref, atol=1e-6, rtol=1e-6)

    out_n = jax.block_until_ready(embedding_forward(x, weight, normalize=True))
    assert jnp.allclose(out_n, ref_n, atol=1e-4, rtol=1e-4)

    # 2) HBM row-DMA gather path (forced), same semantics
    out_g = jax.block_until_ready(
        embedding_forward(x, weight, use_vmem_table=False))
    assert out_g.shape == (batch, seq, hidden_size)
    assert jnp.allclose(out_g, ref, atol=1e-6, rtol=1e-6)

    out_gn = jax.block_until_ready(
        embedding_forward(x, weight, normalize=True, use_vmem_table=False))
    assert jnp.allclose(out_gn, ref_n, atol=1e-4, rtol=1e-4)

    # 3) ragged token count (tail padding) + boundary token ids, both paths
    x2 = jnp.array([[0, vocab_size - 1, 7, 3, 11]], dtype=jnp.int32)
    ref2 = embedding_ref(x2, weight)
    for use_tbl in (True, False):
        out2 = jax.block_until_ready(
            embedding_forward(x2, weight, use_vmem_table=use_tbl))
        assert out2.shape == (1, 5, hidden_size)
        assert jnp.allclose(out2, ref2, atol=1e-6, rtol=1e-6)

    print("KERNEL_OK")
</pallas_src>

<mosaic_0001>
module attributes {stable_mosaic.version = 11 : i64} {
  func.func @_embedding_vmem_kernel(%arg0: i32, %arg1: memref<16x1xi32, #tpu.memory_space<vmem>>, %arg2: memref<64x128xbf16, #tpu.memory_space<vmem>>, %arg3: memref<16x128xf32, #tpu.memory_space<vmem>>) attributes {dimension_semantics = [#tpu.dimension_semantics<parallel>], iteration_bounds = array<i64: 1>, scalar_prefetch = 0 : i64, scratch_operands = 0 : i64, tpu.core_type = #tpu.core_type<tc>, window_params = [{transform_indices = @transform_0, window_bounds = array<i64: 16, 1>}, {pipeline_mode = #tpu.pipeline_mode<synchronous>, transform_indices = @transform_1, window_bounds = array<i64: 64, 128>}, {transform_indices = @transform_2, window_bounds = array<i64: 16, 128>}]} {
    %c0 = arith.constant 0 : index
    %c0_0 = arith.constant 0 : index
    %0 = vector.load %arg1[%c0, %c0_0] : memref<16x1xi32, #tpu.memory_space<vmem>>, vector<16x1xi32>
    %1 = tpu.iota {dimensions = array<i32: 1>} : vector<16x64xi32>
    %2 = vector.broadcast %0 : vector<16x1xi32> to vector<16x64xi32>
    %3 = arith.cmpi eq, %1, %2 : vector<16x64xi32>
    %4 = arith.extui %3 : vector<16x64xi1> to vector<16x64xi32>
    %5 = arith.sitofp %4 : vector<16x64xi32> to vector<16x64xf32>
    %6 = arith.truncf %5 : vector<16x64xf32> to vector<16x64xbf16>
    %c0_1 = arith.constant 0 : index
    %c0_2 = arith.constant 0 : index
    %7 = vector.load %arg2[%c0_1, %c0_2] : memref<64x128xbf16, #tpu.memory_space<vmem>>, vector<64x128xbf16>
    %cst = arith.constant dense<0.000000e+00> : vector<16x128xf32>
    %8 = tpu.matmul %6, %7, %cst {dimension_numbers = #tpu.dot_dimension_numbers<[1], [0], [0], [1], [0, 0, 1, 1], [], []>} : vector<16x64xbf16>, vector<64x128xbf16>, vector<16x128xf32> -> vector<16x128xf32>
    %c0_3 = arith.constant 0 : index
    %c0_4 = arith.constant 0 : index
    %9 = vector.load %arg3[%c0_3, %c0_4] : memref<16x128xf32, #tpu.memory_space<vmem>>, vector<16x128xf32>
    tpu.vector_store %arg3[%c0_3, %c0_4], %8 {strides = array<i32>} : memref<16x128xf32, #tpu.memory_space<vmem>>, vector<16x128xf32>,
    return
  }
  func.func @transform_0(%arg0: i32) -> (i32, i32) {
    %c0_i32 = arith.constant 0 : i32
    %c0_i32_0 = arith.constant 0 : i32
    return %arg0, %c0_i32 : i32, i32
  }
  func.func @transform_1(%arg0: i32) -> (i32, i32) {
    %c0_i32 = arith.constant 0 : i32
    %c0_i32_0 = arith.constant 0 : i32
    %c0_i32_1 = arith.constant 0 : i32
    return %c0_i32, %c0_i32_0 : i32, i32
  }
  func.func @transform_2(%arg0: i32) -> (i32, i32) {
    %c0_i32 = arith.constant 0 : i32
    %c0_i32_0 = arith.constant 0 : i32
    return %arg0, %c0_i32 : i32, i32
  }
}

</mosaic_0001>

<bundles_post_ra>
// kernel: tpu_custom_call.1
= control target key start
LH: loop header
LB: loop body
LE: loop exit
PB: predicated region body
PF: predicated region fallthrough
CT: control target
= control target key end

     0   :  { %7 = vsyncpa [#allocation3], 0  ;;  %s280_s0 = inlined_call_operand.vmem [shape: s32[16,1], index: 0, kind: input, shape index: {}]   ;;  %s281_s1 = inlined_call_operand.hbm [shape: bf16[64,128], index: 1, kind: input, shape index: {}]   ;;  %s282_s2 = inlined_call_operand.hbm [shape: f32[16,128], index: 2, kind: output, shape index: {}]  }
   0x1   :  { %8 = vsyncpa [#allocation4], 0  ;;  %s226_s9 = smov [#allocation2]   ;;  %s178_s13 = scalar_lea.hbm %s281_s1, 512 }
   0x2   :  { %s16_s10 = sshll.u32 %s226_s9, 4  ;;  %p179_p0 = scmp.ne.s32.totalorder %s281_s1, %s178_s13  ;;  %s17_s10 = int_to_ptr.vmem [resolvable:$true] %s16_s10 }
   0x3   :  { %p182_p1 = scmp.lt.u32.totalorder %s178_s13, %s281_s1 }
   0x5   :  { %p184_p2 = pnand %p182_p1, %p179_p0 }
   0x7   :  { %187 = shalt.err (!%p184_p2)
}
   0x8   :  { %s188_s18 = scalar_lea.vmem %s17_s10, 512  ;;  %p193_p4 = scmp.lt.s32.totalorder %s17_s10, %s17_s10 }
   0x9   :  { %p189_p3 = scmp.ne.s32.totalorder %s17_s10, %s188_s18  ;;  %p194_p5 = scmp.lt.s32.totalorder %s188_s18, %s188_s18 }
   0xb   :  { %p195_p6 = por %p194_p5, %p193_p4 }
   0xd   :  { %p196_p7 = pnand %p195_p6, %p189_p3 }
   0xf   :  { %199 = shalt.err (!%p196_p7)
}
  0x10   :  { %s227_s19 = smov 64   ;;  %s228_s20 = smov 4  }
  0x11   :  { %22 = dma.hbm_to_vmem [thread:$0]  %s281_s1, 512, %s17_s10, [#allocation3], %s227_s19, %s227_s19, %s228_s20  }
  0x12   :  { %222 = dma.done.wait [#allocation3], 512  }
  0x13   :  { %223 = vsyncadd [#allocation3], 4294966784  ;;  %v229_v0 = vmov 0   ;;  %v230_v1 = vmov 0.0   ;;  %v27_v2 = vld [vmem:[%s280_s0] sm:$0xff]  ;;  %v28_v4 = vld [vmem:[%s280_s0 + $0x8] sm:$0xff]  ;;  %v29_v8 = vlaneseq }
  0x14   :  { %173 = vset.pattern.permute.xlu0 %v229_v0  ;;  %152 = vmatprep.subr.bf16.mxu0 %v230_v1  ;;  %v174_v3 = vld [vmem:[#allocation2] sm:$0xff]   ;;  %v175_v5 = vld [vmem:[#allocation2 + $0x8] sm:$0xff]   ;;  %v176_v6 = vld [vmem:[#allocation2 + $0x10] sm:$0xff]   ;;  %vm231_vm0 = vmmov 0   ;;  %vm76_vm3 = vcmask 523264   ;;  %s232_s0 = smov [#allocation5]  }
  0x15   :  { %32 = vperm.xlu0 %173, %v27_v2   ;;  %153 = vmatpush3.bf16.msra.mxu0 %v174_v3  ;;  %v177_v7 = vld [vmem:[#allocation2 + $0x18] sm:$0xff]   ;;  %v30_v9 = vand.u32 127, %v29_v8  ;;  %s128_s1 = sshll.u32 %s232_s0, 4  ;;  %s129_s1 = int_to_ptr.vmem [resolvable:$true] %s128_s1 }
  0x16   :  { %154 = vmatprep.subr.bf16.mxu0 %v230_v1  ;;  %160 = vmatprep.mubr.msk.bf16.mxu0 %vm231_vm0, %v230_v1  ;;  %s200_s27 = scalar_lea.vmem %s129_s1, 256  ;;  %p205_p9 = scmp.lt.s32.totalorder %s129_s1, %s129_s1 }
  0x17   :  { %p201_p8 = scmp.ne.s32.totalorder %s129_s1, %s200_s27  ;;  %p206_p10 = scmp.lt.s32.totalorder %s200_s27, %s200_s27 }
  0x19   :  { %35 = vperm.xlu0 %173, %v28_v4   ;;  %155 = vmatpush3.bf16.msra.mxu0 %v175_v5  ;;  %p207_p11 = por %p206_p10, %p205_p9 }
  0x1a   :  { %156 = vmatprep.subr.bf16.mxu0 %v230_v1 }
  0x1b   :  { %p208_p12 = pnand %p207_p11, %p201_p8 }
  0x1d   :  { %157 = vmatpush3.bf16.msra.mxu0 %v176_v6 }
  0x1e   :  { %158 = vmatprep.subr.bf16.mxu0 %v230_v1 }
  0x21   :  { %159 = vmatpush3.bf16.msra.mxu0 %v177_v7 }
  0x94   :  { %v33_v10 = vpop.permute.xlu0 %32 }
  0x95   :  { %vm37_vm1 = vcmp.eq.s32.totalorder %v30_v9, %v33_v10 }
  0x96   :  { %v140_v12 = vsel %vm37_vm1, 1.0, %v230_v1 }
  0x98   :  { %v36_v11 = vpop.permute.xlu0 %35 }
  0x99   :  { %vm38_vm2 = vcmp.eq.s32.totalorder %v30_v9, %v36_v11 }
  0x9a   :  { %v141_v13 = vsel %vm38_vm2, 1.0, %v230_v1 }
  0x9b   :  { %v43_v14 = vpack.c.bf16 %v141_v13, %v140_v12 }
  0x9d   :  { %161 = vmatmul.mubr.msk.bf16.vlgmr.msra.gmra.mrb[0].mxu0 %vm76_vm3, %v43_v14 }
 0x170   :  { %v114_v15 = vpop.f32.mrb[0].mxu0 }
 0x171   :  { %121 = vst [vmem:[#allocation5] sm:$0xff] %v114_v15  ;;  %v162_v16 = vpop.f32.mrb[1].mxu0 }
 0x172   :  { %v117_v17 = vpop.f32.mrb[2].mxu0 }
 0x173   :  { %122 = vst [vmem:[#allocation5 + $0x8] sm:$0xff] %v117_v17  ;;  %v163_v18 = vpop.f32.mrb[3].mxu0 }
 0x174   :  { %211 = shalt.err (!%p208_p12)
}
 0x175   :  { %s212_s30 = scalar_lea.hbm %s282_s2, 256 }
 0x176   :  { %p213_p13 = scmp.ne.s32.totalorder %s282_s2, %s212_s30  ;;  %p216_p0 = scmp.lt.u32.totalorder %s212_s30, %s282_s2 }
 0x178   :  { %p218_p1 = pnand %p216_p0, %p213_p13 }
 0x17a   :  { %221 = shalt.err (!%p218_p1)
}
 0x17b   :  { %s233_s7 = smov 128   ;;  %s234_s8 = smov 8  }
 0x17c   :  { %134 = dma.vmem_to_hbm [thread:$0]  %s129_s1, 256, %s282_s2, [#allocation4], %s233_s7, %s233_s7, %s234_s8  }
 0x17d   :  { %224 = dma.done.wait [#allocation4], 256  }
 0x17e   :  { %225 = vsyncadd [#allocation4], 4294967040 }
 0x17f   :  { %138 = vsyncpa [#allocation3], 1 }
 0x180   :  { %139 = vsyncpa [#allocation4], 1 }

</bundles_post_ra>
